<compile_context>
chip_gen: v7x
topology: tpu7x:2x2x1
jax: 0.10.0
libtpu: 0.0.40
codegen_flags: <defaults>
</compile_context>

<pallas_src>
import functools

import jax
import jax.numpy as jnp
from jax.experimental import pallas as pl
from jax.experimental.pallas import tpu as pltpu

_LANE = 128


def _round_up(n, m):
    return ((n + m - 1) // m) * m


def _chip_budgets():
    """(target_block_bytes, vmem_limit_bytes, multi_core) for the local chip."""
    # Conservative defaults that are safe on every generation (v7x-class).
    target_block = 2 * 1024 * 1024
    vmem_limit = 32 * 1024 * 1024
    multi_core = True
    try:
        info = pltpu.get_tpu_info()
        vmem = int(getattr(info, "vmem_capacity_bytes", 0) or 0)
        if vmem >= 96 * 1024 * 1024:
            # v5e / v6e class: 128 MiB physical VMEM, single TensorCore.
            target_block = 4 * 1024 * 1024
            vmem_limit = 64 * 1024 * 1024
            multi_core = False
        elif vmem > 0:
            # v7x class: 64 MiB physical VMEM, 2 TensorCores per chip.
            target_block = 2 * 1024 * 1024
            vmem_limit = 48 * 1024 * 1024
            multi_core = True
    except Exception:
        pass
    return target_block, vmem_limit, multi_core


def _minmax_norm_kernel(x_ref, o_ref, *, eps):
    # Block = (TB, C, HW_TILE). Reduction is over the full C axis inside the
    # block; every (batch-row, lane) column is independent. Ragged last blocks
    # (batch or lane axis) contain garbage in OOB rows/lanes, which is safe
    # ONLY because nothing here mixes columns and those results are masked on
    # writeback — keep the kernel strictly column-local.
    x = x_ref[...]
    x_max = jnp.max(x, axis=1, keepdims=True)               # exact in any dtype
    # eps / reciprocal in f32 so eps is not absorbed for low-precision inputs.
    inv = pl.reciprocal(x_max.astype(jnp.float32) + eps, approx=False)
    o_ref[...] = (x * inv.astype(x.dtype)).astype(o_ref.dtype)


def minmax_normalization(x: jax.Array, eps: float = 1e-6, *,
                         _target_block_bytes=None) -> jax.Array:
    """x: (B, C, H, W). Returns x / (max over C + eps), same shape/dtype."""
    B, C, H, W = x.shape
    HW = H * W
    itemsize = x.dtype.itemsize

    target_block, vmem_limit, multi_core = _chip_budgets()
    if _target_block_bytes is not None:       # test hook to force tiling paths
        target_block = int(_target_block_bytes)

    # ---- real (sublane-padded) layout sizes ---------------------------------
    sub = max(8, 32 // itemsize)              # 8 (f32) / 16 (bf16) / 32 (int8)
    c_pad = _round_up(C, sub)

    # ---- lane tile: multiple of 128, bounded so one batch-row block fits ----
    per_row_lane_tile_bytes = c_pad * _LANE * itemsize
    lanes_budget = max(_LANE,
                       (target_block // per_row_lane_tile_bytes) * _LANE)
    if HW <= lanes_budget:
        hw_tile = HW                          # full extent: no ragged lane block
    else:
        hw_tile = lanes_budget                # multiple of 128; last block ragged
    grid_hw = pl.cdiv(HW, hw_tile)

    # ---- batch tile: pack rows to amortize ~0.35us/step; cdiv handles any B -
    row_block_bytes = c_pad * hw_tile * itemsize
    tb_cap = max(1, target_block // row_block_bytes)
    tb = min(B, tb_cap)
    grid_b = pl.cdiv(B, tb)

    # ---- v7x: make sure both TensorCores get at least one grid step ---------
    if multi_core and grid_b * grid_hw < 2:
        if B >= 2:
            tb = pl.cdiv(B, 2)
            grid_b = pl.cdiv(B, tb)
        elif HW >= 2 * _LANE:
            hw_tile = _round_up(pl.cdiv(HW, 2), _LANE)
            grid_hw = pl.cdiv(HW, hw_tile)

    x2 = x.reshape(B, C, HW)                  # contiguous reshape: no HBM copy

    out = pl.pallas_call(
        functools.partial(_minmax_norm_kernel, eps=float(eps)),
        out_shape=jax.ShapeDtypeStruct((B, C, HW), x.dtype),
        grid_spec=pltpu.PrefetchScalarGridSpec(
            num_scalar_prefetch=0,
            grid=(grid_b, grid_hw),
            in_specs=[pl.BlockSpec((tb, C, hw_tile), lambda b, t: (b, 0, t))],
            out_specs=pl.BlockSpec((tb, C, hw_tile), lambda b, t: (b, 0, t)),
        ),
        compiler_params=pltpu.CompilerParams(
            dimension_semantics=("parallel", "parallel"),
            vmem_limit_bytes=vmem_limit,
        ),
    )(x2)

    return out.reshape(B, C, H, W)


def _reference(x, eps=1e-6):
    x32 = x.astype(jnp.float32)
    r = x32 / (jnp.max(x32, axis=1, keepdims=True) + eps)
    return r.astype(x.dtype)


if __name__ == "__main__":
    key = jax.random.PRNGKey(0)
    k0, k1, k2, k3, k4 = jax.random.split(key, 5)

    # Main test: small NCHW input consistent with the module.
    x = jax.random.normal(k0, (2, 4, 16, 16), dtype=jnp.float32)
    out = jax.block_until_ready(minmax_normalization(x))
    assert out.shape == x.shape and out.dtype == x.dtype
    assert jnp.allclose(out, _reference(x), rtol=1e-5, atol=1e-5)

    # Non-128-multiple spatial size: full-extent lane block, no pad/slice.
    x_odd = jax.random.normal(k1, (2, 4, 10, 12), dtype=jnp.float32)
    out_odd = jax.block_until_ready(minmax_normalization(x_odd))
    assert jnp.allclose(out_odd, _reference(x_odd), rtol=1e-5, atol=1e-5)

    # Odd batch size: exercises cdiv batch packing (ragged last batch block on
    # multi-core chips).
    x_b3 = jax.random.normal(k2, (3, 4, 16, 16), dtype=jnp.float32)
    out_b3 = jax.block_until_ready(minmax_normalization(x_b3))
    assert jnp.allclose(out_b3, _reference(x_b3), rtol=1e-5, atol=1e-5)

    # Tiny forced block budget: exercises the ragged last lane block path
    # (hw_tile=128 over HW=200, second block masked on writeback).
    x_rag = jax.random.normal(k3, (2, 4, 10, 20), dtype=jnp.float32)
    out_rag = jax.block_until_ready(
        minmax_normalization(x_rag, _target_block_bytes=4096))
    assert jnp.allclose(out_rag, _reference(x_rag), rtol=1e-5, atol=1e-5)

    # bf16 input: max in bf16, eps/reciprocal in f32, multiply in bf16.
    x_bf = jax.random.normal(k4, (2, 4, 16, 16), dtype=jnp.bfloat16)
    out_bf = jax.block_until_ready(minmax_normalization(x_bf))
    assert out_bf.dtype == jnp.bfloat16
    assert jnp.allclose(out_bf.astype(jnp.float32),
                        _reference(x_bf).astype(jnp.float32),
                        rtol=2e-2, atol=2e-2)

    print("KERNEL_OK")
</pallas_src>

<mosaic_0001>
module attributes {stable_mosaic.version = 11 : i64} {
  func.func @_minmax_norm_kernel(%arg0: i32, %arg1: i32, %arg2: memref<1x4x256xf32, #tpu.memory_space<vmem>>, %arg3: memref<1x4x256xf32, #tpu.memory_space<vmem>>) attributes {dimension_semantics = [#tpu.dimension_semantics<parallel>, #tpu.dimension_semantics<parallel>], iteration_bounds = array<i64: 2, 1>, scalar_prefetch = 0 : i64, scratch_operands = 0 : i64, tpu.core_type = #tpu.core_type<tc>, window_params = [{transform_indices = @transform_0, window_bounds = array<i64: 1, 4, 256>}, {transform_indices = @transform_1, window_bounds = array<i64: 1, 4, 256>}]} {
    %c0 = arith.constant 0 : index
    %c0_0 = arith.constant 0 : index
    %c0_1 = arith.constant 0 : index
    %0 = vector.load %arg2[%c0, %c0_0, %c0_1] : memref<1x4x256xf32, #tpu.memory_space<vmem>>, vector<1x4x256xf32>
    %cst = arith.constant dense<0xFF800000> : vector<1x256xf32>
    %1 = vector.multi_reduction <maximumf>, %0, %cst [1] : vector<1x4x256xf32> to vector<1x256xf32>
    %2 = vector.shape_cast %1 : vector<1x256xf32> to vector<1x1x256xf32>
    %cst_2 = arith.constant 9.99999997E-7 : f32
    %3 = vector.broadcast %cst_2 : f32 to vector<1x1x256xf32>
    %4 = arith.addf %2, %3 : vector<1x1x256xf32>
    %5 = tpu.reciprocal %4 : vector<1x1x256xf32> -> vector<1x1x256xf32>
    %6 = vector.broadcast %5 : vector<1x1x256xf32> to vector<1x4x256xf32>
    %7 = arith.mulf %0, %6 : vector<1x4x256xf32>
    %c0_3 = arith.constant 0 : index
    %c0_4 = arith.constant 0 : index
    %c0_5 = arith.constant 0 : index
    %8 = vector.load %arg3[%c0_3, %c0_4, %c0_5] : memref<1x4x256xf32, #tpu.memory_space<vmem>>, vector<1x4x256xf32>
    tpu.vector_store %arg3[%c0_3, %c0_4, %c0_5], %7 {strides = array<i32>} : memref<1x4x256xf32, #tpu.memory_space<vmem>>, vector<1x4x256xf32>,
    return
  }
  func.func @transform_0(%arg0: i32, %arg1: i32) -> (i32, i32, i32) {
    %c0_i32 = arith.constant 0 : i32
    %c0_i32_0 = arith.constant 0 : i32
    return %arg0, %c0_i32, %arg1 : i32, i32, i32
  }
  func.func @transform_1(%arg0: i32, %arg1: i32) -> (i32, i32, i32) {
    %c0_i32 = arith.constant 0 : i32
    %c0_i32_0 = arith.constant 0 : i32
    return %arg0, %c0_i32, %arg1 : i32, i32, i32
  }
}

</mosaic_0001>

<bundles_post_ra>
// kernel: tpu_custom_call.1
= control target key start
LH: loop header
LB: loop body
LE: loop exit
PB: predicated region body
PF: predicated region fallthrough
CT: control target
= control target key end

     0   :  { %6 = vsyncpa [#allocation3], 0  ;;  %s665_s0 = inlined_call_operand.hbm [shape: f32[2,4,256], index: 0, kind: input, shape index: {}]   ;;  %s666_s1 = inlined_call_operand.hbm [shape: f32[2,4,256], index: 1, kind: output, shape index: {}]  }
   0x1   :  { %8 = vsyncpa [#allocation3 + $0x1], 0 }
   0x2   :  { %9 = vsyncpa [#allocation4], 0 }
   0x3   :  { %11 = vsyncpa [#allocation4 + $0x1], 0  ;;  %s493_s6 = smov 0   ;;  %s495_s7 = smov 0  }
   0x4   :  { %s497_s8 = smov 0   ;;  %s499_s9 = smov 0  }
   0x5   :  { %s501_s10 = smov 0   ;;  %s503_s11 = smov 0  }
   0x6 LB: > { %s283_s12 = sadd.s32 4294967295, %s479_s11   ;;  %s284_s13 = sadd.s32 4294967294, %s479_s11   ;;  %s479_s11 = sphi %s503_s11, %s17_s11   ;;  %s475_s10 = sphi %s501_s10, %s682_s10   ;;  %s471_s9 = sphi %s499_s9, %s681_s9   ;;  %s467_s8 = sphi %s497_s8, %s680_s8   ;;  %s463_s7 = sphi %s495_s7, %s679_s7   ;;  %s459_s6 = sphi %s493_s6, %s678_s6  }
   0x7   : > { %s29_s14 = sadd.s32 1, %s475_s10  ;;  %s38_s15 = sadd.s32 1, %s467_s8 }
   0x8   : > { %p31_p0 = scmp.ge.s32.totalorder %s29_s14, 2  ;;  %p45_p1 = scmp.ne.s32.totalorder %s467_s8, %s463_s7 }
   0x9   : > { %p46_p2 = scmp.eq.s32.totalorder %s479_s11, 0  ;;  %p51_p3 = scmp.ne.s32.totalorder %s463_s7, %s459_s6 }
   0xa   : > { %s684_s14 = smov (%p31_p0, %s29_s14), 0  ;;  %p52_p5 = scmp.eq.s32.totalorder %s283_s12, 0 }
   0xb   : > { %p534_p4 = por %p46_p2, %p45_p1  ;;  %s33_s17 = ssub.s32 %s475_s10, %s684_s14 }
   0xc   : > { %p77_p6 = scmp.eq.s32.totalorder %s283_s12, 1  ;;  %p36_p7 = scmp.eq.s32.totalorder %s33_s17, 0 }
   0xd   : > { %p540_p8 = por %p52_p5, %p51_p3  ;;  %p83_p10 = scmp.eq.s32.totalorder %s284_s13, 1 }
   0xe   : > { %p544_p9 = por %p77_p6, %p45_p1  ;;  %p312_p13 = scmp.lt.s32.totalorder %s479_s11, 2 }
   0xf   : > { %s549_s20 = scalar_select %p36_p7, %s467_s8, %s38_s15  }
  0x10   : > { %s670_s19 = scalar_select %p544_p9, 1, 0 }
  0x11   : > { %p551_p11 = por %p83_p10, %p51_p3  ;;  %s103_s22 = sand.u32 1, %s467_s8  }
  0x12   : > { %s287_s23 = sshll.u32 %s103_s22, 3  ;;  %s298_s24 = sshll.u32 %s475_s10, 7 }
  0x13   : > { %s671_s21 = scalar_select %p551_p11, 1, 0 }
  0x14   : > { %s562_s27 = scalar_lea.hbm %s665_s0, %s298_s24  ;;  %s107_s28 = scalar_lea.vmem [#allocation2], %s287_s23 }
  0x15   : > { %s117_s29 = sshll.u32 %s107_s28, 4  ;;  %p568_p0 = pnand %p312_p13, %p534_p4  ;;  %s564_s29 = int_to_ptr.vmem [resolvable:$true] %s117_s29 }
  0x16   : > { %s104_s2 = scalar_lea.sflag [#allocation3], %s103_s22  ;;  %s367_s3 = scalar_lea.hbm %s562_s27, 128 }
  0x17   : > { %p368_p3 = scmp.ne.s32.totalorder %s562_s27, %s367_s3  ;;  %p369_p5 = pneg %p568_p0 }
  0x18   : > { %s372_s12 = scalar_lea.hbm %s665_s0, 256  ;;  %p373_p4 = scmp.lt.u32.totalorder %s562_s27, %s665_s0 }
  0x19   : > { %p370_p6 = pnand %p369_p5, %p368_p3  ;;  %p374_p10 = scmp.lt.u32.totalorder %s372_s12, %s367_s3 }
  0x1a   : > { %p376_p12 = scmp.lt.u32.totalorder %s367_s3, %s562_s27 }
  0x1b   : > { %p371_p7 = pneg %p370_p6  ;;  %p375_p13 = por %p374_p10, %p373_p4 }
  0x1d   : > { %p377_p1 = por %p376_p12, %p375_p13 }
  0x1f   : > { %p378_p2 = pnand %p377_p1, %p371_p7 }
  0x21   : > { %381 = shalt.err (!%p378_p2)
}
  0x22   : > { %s382_s16 = scalar_lea.vmem %s564_s29, 128  ;;  %s481_s17 = smov [#allocation2]  }
  0x23   : > { %p383_p3 = scmp.ne.s32.totalorder %s564_s29, %s382_s16  ;;  %s387_s22 = sshll.u32 %s481_s17, 4  ;;  %s388_s22 = int_to_ptr.vmem [resolvable:$false] %s387_s22 }
  0x24   : > { %s389_s23 = scalar_lea.vmem %s388_s22, 256  ;;  %p390_p9 = scmp.lt.s32.totalorder %s564_s29, %s388_s22 }
  0x25   : > { %p385_p6 = pnand %p383_p3, %p369_p5  ;;  %p391_p4 = scmp.lt.s32.totalorder %s389_s23, %s382_s16 }
  0x27   : > { %p386_p11 = pneg %p385_p6  ;;  %p392_p10 = por %p391_p4, %p390_p9 }
  0x29   : > { %p393_p12 = pnand %p392_p10, %p386_p11 }
  0x2b   : > { %396 = shalt.err (!%p393_p12)
}
  0x2c   : > { %307 = dma.hbm_to_vmem [thread:$0]  (!%p568_p0), %s562_s27, 128, %s564_s29, %s104_s2  }
  0x2d   : > { %p673_p1 = scmp.lt.s32.totalorder %s479_s11, 3  ;;  %p674_p2 = scmp.ge.s32.totalorder %s479_s11, 1 }
  0x2f   : > { %p123_p5 = pnand %p674_p2, %p673_p1 }
  0x30   : > { %s604_s24 = sand.u32 (!%p123_p5), 1, %s463_s7  }
  0x31   : > { %126 = sbr.rel (%p123_p5) target bundleno = 104 (0x68), region = 24  ;;  %s291_s25 = sshll.u32 (!%p123_p5), %s604_s24, 3 }
  0x32   : > { %s129_s26 = scalar_lea.sflag (!%p123_p5), [#allocation3], %s604_s24  ;;  %s132_s28 = scalar_lea.vmem (!%p123_p5), [#allocation2], %s291_s25 }
  0x38   : > { %450 = dma.done.wait (%p540_p8), %s129_s26, 128  }
  0x39   : > { %452 = vsyncadd (%p540_p8), %s129_s26, 4294967168  ;;  %vm157_vm0 = vcmask 1043456   ;;  %v153_v0 = vld [vmem:[%s132_s28] sm:$0xff]  ;;  %s150_s18 = scalar_lea.vmem [#allocation5], %s291_s25  ;;  %s299_s29 = sshll.u32 %s471_s9, 7 }
  0x3a   : > { %v155_v1 = vcombine.high %v153_v0, %v153_v0  ;;  %v158_v2 = vsel %vm157_vm0, %v153_v0, -inf  ;;  %s199_s27 = sshll.u32 %s150_s18, 4  ;;  %s618_s3 = scalar_lea.hbm %s666_s1, %s299_s29  ;;  %s613_s27 = int_to_ptr.vmem [resolvable:$true] %s199_s27 }
  0x3b   : > { %v159_v3 = vrot.slane %v158_v2, 4  ;;  %s183_s4 = scalar_lea.sflag [#allocation4], %s604_s24  ;;  %s397_s5 = scalar_lea.vmem %s613_s27, 128 }
  0x3c   : > { %v165_v4 = vsel %vm157_vm0, %v155_v1, -inf  ;;  %p398_p8 = scmp.ne.s32.totalorder %s613_s27, %s397_s5  ;;  %p675_p9 = scmp.ne.s32.totalorder %s670_s19, 0 }
  0x3d   : > { %v160_v5 = vmax.f32 %v158_v2, %v159_v3  ;;  %v166_v6 = vrot.slane %v165_v4, 4  ;;  %s482_s9 = smov [#allocation5]  }
  0x3e   : > { %p399_p11 = pnand %p398_p8, %p675_p9  ;;  %s401_s12 = sshll.u32 %s482_s9, 4  ;;  %s402_s12 = int_to_ptr.vmem [resolvable:$false] %s401_s12 }
  0x3f   : > { %v161_v7 = vrot.slane %v160_v5, 2  ;;  %v167_v8 = vmax.f32 %v165_v4, %v166_v6  ;;  %s403_s13 = scalar_lea.vmem %s402_s12, 256  ;;  %p404_p7 = scmp.lt.s32.totalorder %s613_s27, %s402_s12 }
  0x40   : > { %p400_p0 = pneg %p399_p11  ;;  %p405_p13 = scmp.lt.s32.totalorder %s403_s13, %s397_s5 }
  0x41   : > { %v162_v9 = vmax.f32 %v160_v5, %v161_v7  ;;  %v168_v10 = vrot.slane %v167_v8, 2 }
  0x42   : > { %p406_p3 = por %p405_p13, %p404_p7 }
  0x43   : > { %v163_v11 = vrot.slane %v162_v9, 1  ;;  %v169_v12 = vmax.f32 %v167_v8, %v168_v10 }
  0x44   : > { %p407_p6 = pnand %p406_p3, %p400_p0 }
  0x45   : > { %v164_v13 = vmax.f32 %v162_v9, %v163_v11  ;;  %v170_v14 = vrot.slane %v169_v12, 1 }
  0x47   : > { %v171_v15 = vmax.f32 %v169_v12, %v170_v14  ;;  %v172_v16 = vadd.f32 1e-06, %v164_v13 }
  0x49   : > { %v173_v17 = vadd.f32 1e-06, %v171_v15  ;;  %363 = vrcp.f32 %v172_v16 }
  0x4b   : > { %365 = vrcp.f32 %v173_v17 }
  0x53   : > { %v364_v18 = vpop.eup %363 }
  0x55   : > { %v366_v19 = vpop.eup %365 }
  0x56   : > { %v178_v20 = vcombine.low %v364_v18, %v366_v19 }
  0x58   : > { %v180_v21 = vmul.f32 %v178_v20, %v153_v0 }
  0x5a   : > { %181 = vst [vmem:[%s150_s18] sm:$0xff] %v180_v21 }
  0x5b   : > { %410 = shalt.err (!%p407_p6)
}
  0x5c   : > { %s411_s15 = scalar_lea.hbm %s618_s3, 128  ;;  %s415_s22 = scalar_lea.hbm %s666_s1, 256 }
  0x5d   : > { %p412_p4 = scmp.ne.s32.totalorder %s618_s3, %s411_s15  ;;  %p416_p1 = scmp.lt.u32.totalorder %s618_s3, %s666_s1 }
  0x5e   : > { %p417_p2 = scmp.lt.u32.totalorder %s415_s22, %s411_s15  ;;  %p419_p8 = scmp.lt.u32.totalorder %s411_s15, %s618_s3 }
  0x5f   : > { %p413_p10 = pnand %p412_p4, %p675_p9 }
  0x60   : > { %p418_p5 = por %p417_p2, %p416_p1 }
  0x61   : > { %p414_p12 = pneg %p413_p10 }
  0x62   : > { %p420_p11 = por %p419_p8, %p418_p5 }
  0x64   : > { %p421_p0 = pnand %p420_p11, %p414_p12 }
  0x66   : > { %424 = shalt.err (!%p421_p0)
}
  0x67   : > { %302 = dma.vmem_to_hbm [thread:$0]  (%p675_p9), %s613_s27, 128, %s618_s3, %s183_s4  }
  0x68 PF: > { %s211_s25 = sand.u32 1, %s459_s6   ;;  %p676_p7 = scmp.ne.s32.totalorder %s671_s21, 0 }
  0x69   : > { %p677_p13 = scmp.ge.s32.totalorder %s479_s11, 2  ;;  %s212_s26 = scalar_lea.sflag [#allocation4], %s211_s25 }
  0x6b   : > { %p309_p3 = pnand %p677_p13, %p676_p7 }
  0x6d   : > { %454 = dma.done.wait (!%p309_p3), %s212_s26, 128  }
  0x6e   : > { %456 = vsyncadd (!%p309_p3), %s212_s26, 4294967168  ;;  %s17_s11 = sadd.s32 1, %s479_s11   ;;  %s678_s6 = smov %s463_s7 }
  0x6f   : > { %p14_p6 = scmp.ge.s32.totalorder %s17_s11, 4   ;;  %s679_s7 = smov %s467_s8 }
  0x70   : > { %s680_s8 = smov %s549_s20  ;;  %s681_s9 = smov %s475_s10 }
  0x71   : > { %s682_s10 = smov %s684_s14  ;;  %16 = sbr.rel (!%p14_p6) target bundleno = 6 (0x6), region = 69 }
  0x78   :  { %217 = vsyncpa [#allocation3], 1 }
  0x79   :  { %219 = vsyncpa [#allocation3 + $0x1], 1 }
  0x7a   :  { %220 = vsyncpa [#allocation4], 1 }
  0x7b   :  { %222 = vsyncpa [#allocation4 + $0x1], 1 }

</bundles_post_ra>
